<compile_context>
chip_gen: v7x
topology: tpu7x:2x2x1
jax: 0.10.0
libtpu: 0.0.40
codegen_flags: <defaults>
</compile_context>

<pallas_src>
import functools
import math

import jax
import jax.numpy as jnp
import numpy as np
from jax.experimental import pallas as pl
from jax.experimental.pallas import tpu as pltpu

_LN2 = math.log(2.0)
_MAX_BLOCK_BYTES = 2 * 1024 * 1024   # per input block; 2 inputs x 2 buffers ~= 8 MiB VMEM
_MAX_TILE_ROWS = 1024                # also bounds the unrolled accumulation loop


def _ls_bce_kernel(y_ref, t_ref, o_ref, acc_ref, *, alpha, k):
    """Grid = (split, row_tile). Accumulates per-lane partial sums in acc_ref
    and writes one scalar partial sum per split index into o_ref."""
    i = pl.program_id(1)                      # reduction axis (row tiles)

    @pl.when(i == 0)
    def _init():
        acc_ref[...] = jnp.zeros_like(acc_ref)

    y = y_ref[...].astype(jnp.float32)
    t = t_ref[...].astype(jnp.float32)

    # fused label smoothing
    t_s = t * (1.0 - alpha) + (alpha / k)

    # numerically-stable BCE with logits (same formulation as PyTorch)
    # TODO(synk): on v7x, if the EUP (exp+log) slot is measured to be the
    # binding slot, consider a bf16 softplus term (verify tolerance first).
    per = (jnp.maximum(y, 0.0) - y * t_s
           + jnp.log(1.0 + jnp.exp(-jnp.abs(y))))

    # Hot-loop accumulation uses only vreg-aligned VPU adds (static 8-row
    # slices); the expensive cross-sublane + lane reduce runs once at the end.
    tr = per.shape[0]
    ar = acc_ref.shape[0]
    acc = acc_ref[...]
    for r0 in range(0, tr, ar):
        acc = acc + per[r0:r0 + ar, :]
    acc_ref[...] = acc

    @pl.when(i == pl.num_programs(1) - 1)
    def _finalize():
        o_ref[...] = jnp.sum(acc_ref[...], keepdims=True)


def _row_cap(c, itemsize, tile_rows):
    cap = (_MAX_BLOCK_BYTES // (c * itemsize)) // 8 * 8
    cap = max(8, min(cap, _MAX_TILE_ROWS))
    if tile_rows is not None:
        cap = max(8, min(cap, (int(tile_rows) // 8) * 8))
    return cap


def _no_copy_tiling(total, c, cap):
    """Row-tile size TR for a copy-free (rows, c) layout, or None."""
    if total % c:
        return None
    rows = total // c
    if rows <= cap:
        return rows                          # single full-height tile
    if rows % 8:
        return None
    lo = max(8, cap // 4)                    # avoid pathologically tiny tiles
    for cand in range(cap, lo - 1, -8):
        if rows % cand == 0:
            return cand
    return None


def ls_bce_with_logits_loss(y, t, *, k, alpha=0.01,
                            lane_cols=None, tile_rows=None):
    """Label-smoothed BCEWithLogits loss (mean reduction) via Pallas.

    y, t: same-shape arrays (any rank, f32/bf16/...); k: class count for
    smoothing.  lane_cols / tile_rows optionally override the auto tiling.
    """
    assert y.shape == t.shape, "logits and targets must have the same shape"
    total = int(y.size)
    assert total > 0
    itemsize = max(y.dtype.itemsize, t.dtype.itemsize)

    # ---- pick a lane-dense layout, preferring one that needs no HBM copy.
    cand_cols = [int(lane_cols)] if lane_cols is not None else [1024, 512, 256, 128]
    C = TR = None
    for c in cand_cols:
        assert c % 128 == 0, "lane_cols must be a multiple of 128"
        tr = _no_copy_tiling(total, c, _row_cap(c, itemsize, tile_rows))
        if tr is not None:
            C, TR = c, tr
            break

    if C is not None:                        # fast path: reshape only, no copy
        rows_pad, pad = total // C, 0
        y2 = y.reshape(rows_pad, C)
        t2 = t.reshape(rows_pad, C)
    else:                                    # ragged sizes: zero-pad (corrected below)
        C = int(lane_cols) if lane_cols is not None else 512
        rows = -(-total // C)
        TR = min(_row_cap(C, itemsize, tile_rows), max(8, -(-rows // 8) * 8))
        n_tiles = -(-rows // TR)
        if n_tiles >= 2 and n_tiles % 2:
            n_tiles += 1                     # even tile count enables 2-way split
        rows_pad = n_tiles * TR
        pad = rows_pad * C - total
        y2 = jnp.pad(y.reshape(-1), (0, pad)).reshape(rows_pad, C)
        t2 = jnp.pad(t.reshape(-1), (0, pad)).reshape(rows_pad, C)

    n_tiles = rows_pad // TR
    P = 2 if (n_tiles >= 2 and n_tiles % 2 == 0) else 1   # v7x: one half per TC
    n_steps = n_tiles // P
    acc_rows = 8 if TR % 8 == 0 else TR

    kernel = functools.partial(_ls_bce_kernel, alpha=float(alpha), k=float(k))

    grid_spec = pltpu.PrefetchScalarGridSpec(
        num_scalar_prefetch=0,
        grid=(P, n_steps),
        in_specs=[
            pl.BlockSpec((TR, C), lambda s, i: (s * n_steps + i, 0)),
            pl.BlockSpec((TR, C), lambda s, i: (s * n_steps + i, 0)),
        ],
        out_specs=pl.BlockSpec((1, 1), lambda s, i: (s, 0)),
        scratch_shapes=[pltpu.VMEM((acc_rows, C), jnp.float32)],
    )

    partial_sums = pl.pallas_call(
        kernel,
        out_shape=jax.ShapeDtypeStruct((P, 1), jnp.float32),
        grid_spec=grid_spec,
        compiler_params=pltpu.CompilerParams(
            dimension_semantics=("parallel", "arbitrary"),
            vmem_limit_bytes=32 * 1024 * 1024),
    )(y2, t2)

    loss_sum = jnp.sum(partial_sums)
    if pad:
        # each zero-padded element (y=0, t=0) contributes exactly log(2)
        loss_sum = loss_sum - jnp.float32(pad * _LN2)
    return loss_sum / jnp.float32(total)


def _reference(y, t, k, alpha):
    t_s = t * (1.0 - alpha) + alpha / k
    per = (jnp.maximum(y, 0.0) - y * t_s
           + jnp.log(1.0 + jnp.exp(-jnp.abs(y))))
    return jnp.mean(per)


if __name__ == "__main__":
    key = jax.random.PRNGKey(0)
    k1, k2, k3, k4, k5, k6 = jax.random.split(key, 6)

    # --- test 1: small shape, single-tile, copy-free fast path ---
    B, S, K = 2, 8, 32
    alpha = 0.01
    y = jax.random.normal(k1, (B, S, K), jnp.float32)
    t = (jax.random.uniform(k2, (B, S, K)) > 0.5).astype(jnp.float32)
    loss = jax.block_until_ready(ls_bce_with_logits_loss(y, t, k=K, alpha=alpha))
    ref = _reference(y, t, K, alpha)
    np.testing.assert_allclose(np.asarray(loss), np.asarray(ref),
                               rtol=1e-5, atol=1e-6)

    # --- test 2: ragged sizes -> padded fallback, multi-step + 2-way split ---
    y_b = jax.random.normal(k3, (3, 50, 17), jnp.float32)
    t_b = (jax.random.uniform(k4, (3, 50, 17)) > 0.5).astype(jnp.float32)
    loss_b = jax.block_until_ready(
        ls_bce_with_logits_loss(y_b, t_b, k=17, alpha=0.05,
                                lane_cols=128, tile_rows=8))
    ref_b = _reference(y_b, t_b, 17, 0.05)
    np.testing.assert_allclose(np.asarray(loss_b), np.asarray(ref_b),
                               rtol=1e-5, atol=1e-6)

    # --- test 3: bf16 inputs, copy-free multi-tile path with 2-way split ---
    y_c = jax.random.normal(k5, (8, 64, 256), jnp.bfloat16)
    t_c = (jax.random.uniform(k6, (8, 64, 256)) > 0.5).astype(jnp.bfloat16)
    loss_c = jax.block_until_ready(
        ls_bce_with_logits_loss(y_c, t_c, k=256, alpha=0.01, tile_rows=32))
    ref_c = _reference(y_c.astype(jnp.float32), t_c.astype(jnp.float32),
                       256, 0.01)
    np.testing.assert_allclose(np.asarray(loss_c), np.asarray(ref_c),
                               rtol=1e-5, atol=1e-6)

    print("KERNEL_OK")
</pallas_src>

<mosaic_0001>
module attributes {stable_mosaic.version = 11 : i64} {
  func.func @_ls_bce_kernel(%arg0: i32, %arg1: i32, %arg2: memref<1x512xf32, #tpu.memory_space<vmem>>, %arg3: memref<1x512xf32, #tpu.memory_space<vmem>>, %arg4: memref<1x1xf32, #tpu.memory_space<vmem>>, %arg5: memref<1x512xf32, #tpu.memory_space<vmem>>) attributes {dimension_semantics = [#tpu.dimension_semantics<parallel>, #tpu.dimension_semantics<arbitrary>], iteration_bounds = array<i64: 1, 1>, scalar_prefetch = 0 : i64, scratch_operands = 1 : i64, tpu.core_type = #tpu.core_type<tc>, window_params = [{transform_indices = @transform_0, window_bounds = array<i64: 1, 512>}, {transform_indices = @transform_1, window_bounds = array<i64: 1, 512>}, {transform_indices = @transform_2, window_bounds = array<i64: 1, 1>}]} {
    %c0_i32 = arith.constant 0 : i32
    %0 = arith.cmpi eq, %arg1, %c0_i32 : i32
    %1 = arith.extui %0 : i1 to i32
    %c0_i32_0 = arith.constant 0 : i32
    %2 = arith.cmpi ne, %1, %c0_i32_0 : i32
    scf.if %2 {
      %cst_14 = arith.constant 0.000000e+00 : f32
      %27 = vector.broadcast %cst_14 : f32 to vector<1x512xf32>
      %c0_15 = arith.constant 0 : index
      %c0_16 = arith.constant 0 : index
      %28 = vector.load %arg5[%c0_15, %c0_16] : memref<1x512xf32, #tpu.memory_space<vmem>>, vector<1x512xf32>
      tpu.vector_store %arg5[%c0_15, %c0_16], %27 {strides = array<i32>} : memref<1x512xf32, #tpu.memory_space<vmem>>, vector<1x512xf32>,
    } else {
    }
    %c0 = arith.constant 0 : index
    %c0_1 = arith.constant 0 : index
    %3 = vector.load %arg2[%c0, %c0_1] : memref<1x512xf32, #tpu.memory_space<vmem>>, vector<1x512xf32>
    %c0_2 = arith.constant 0 : index
    %c0_3 = arith.constant 0 : index
    %4 = vector.load %arg3[%c0_2, %c0_3] : memref<1x512xf32, #tpu.memory_space<vmem>>, vector<1x512xf32>
    %cst = arith.constant 9.900000e-01 : f32
    %5 = vector.broadcast %cst : f32 to vector<1x512xf32>
    %6 = arith.mulf %4, %5 : vector<1x512xf32>
    %cst_4 = arith.constant 3.125000e-04 : f32
    %7 = vector.broadcast %cst_4 : f32 to vector<1x512xf32>
    %8 = arith.addf %6, %7 : vector<1x512xf32>
    %cst_5 = arith.constant 0.000000e+00 : f32
    %9 = vector.broadcast %cst_5 : f32 to vector<1x512xf32>
    %10 = arith.maximumf %3, %9 : vector<1x512xf32>
    %11 = arith.mulf %3, %8 : vector<1x512xf32>
    %12 = arith.subf %10, %11 : vector<1x512xf32>
    %13 = math.absf %3 : vector<1x512xf32>
    %cst_6 = arith.constant 0.000000e+00 : f32
    %14 = vector.broadcast %cst_6 : f32 to vector<1x512xf32>
    %15 = arith.subf %14, %13 : vector<1x512xf32>
    %16 = math.exp %15 : vector<1x512xf32>
    %cst_7 = arith.constant 1.000000e+00 : f32
    %17 = vector.broadcast %cst_7 : f32 to vector<1x512xf32>
    %18 = arith.addf %17, %16 : vector<1x512xf32>
    %19 = math.log %18 : vector<1x512xf32>
    %20 = arith.addf %12, %19 : vector<1x512xf32>
    %c0_8 = arith.constant 0 : index
    %c0_9 = arith.constant 0 : index
    %21 = vector.load %arg5[%c0_8, %c0_9] : memref<1x512xf32, #tpu.memory_space<vmem>>, vector<1x512xf32>
    %22 = arith.addf %21, %20 : vector<1x512xf32>
    %c0_10 = arith.constant 0 : index
    %c0_11 = arith.constant 0 : index
    %23 = vector.load %arg5[%c0_10, %c0_11] : memref<1x512xf32, #tpu.memory_space<vmem>>, vector<1x512xf32>
    tpu.vector_store %arg5[%c0_10, %c0_11], %22 {strides = array<i32>} : memref<1x512xf32, #tpu.memory_space<vmem>>, vector<1x512xf32>,
    %c0_i32_12 = arith.constant 0 : i32
    %24 = arith.cmpi eq, %arg1, %c0_i32_12 : i32
    %25 = arith.extui %24 : i1 to i32
    %c0_i32_13 = arith.constant 0 : i32
    %26 = arith.cmpi ne, %25, %c0_i32_13 : i32
    scf.if %26 {
      %c0_14 = arith.constant 0 : index
      %c0_15 = arith.constant 0 : index
      %27 = vector.load %arg5[%c0_14, %c0_15] : memref<1x512xf32, #tpu.memory_space<vmem>>, vector<1x512xf32>
      %28 = vector.shape_cast %27 : vector<1x512xf32> to vector<1x1x512xf32>
      %cst_16 = arith.constant dense<0.000000e+00> : vector<1xf32>
      %29 = vector.multi_reduction <add>, %28, %cst_16 [1, 2] : vector<1x1x512xf32> to vector<1xf32>
      %30 = vector.shape_cast %29 : vector<1xf32> to vector<1x1x1xf32>
      %31 = vector.extract %30[0, 0, 0] : f32 from vector<1x1x1xf32>
      %32 = vector.broadcast %31 : f32 to vector<1x1xf32>
      %c0_17 = arith.constant 0 : index
      %c0_18 = arith.constant 0 : index
      %33 = vector.load %arg4[%c0_17, %c0_18] : memref<1x1xf32, #tpu.memory_space<vmem>>, vector<1x1xf32>
      tpu.vector_store %arg4[%c0_17, %c0_18], %32 {strides = array<i32>} : memref<1x1xf32, #tpu.memory_space<vmem>>, vector<1x1xf32>,
    } else {
    }
    return
  }
  func.func @transform_0(%arg0: i32, %arg1: i32) -> (i32, i32) {
    %c1_i32 = arith.constant 1 : i32
    %0 = arith.muli %arg0, %c1_i32 : i32
    %1 = arith.addi %0, %arg1 : i32
    %c0_i32 = arith.constant 0 : i32
    %c0_i32_0 = arith.constant 0 : i32
    return %1, %c0_i32 : i32, i32
  }
  func.func @transform_1(%arg0: i32, %arg1: i32) -> (i32, i32) {
    %c1_i32 = arith.constant 1 : i32
    %0 = arith.muli %arg0, %c1_i32 : i32
    %1 = arith.addi %0, %arg1 : i32
    %c0_i32 = arith.constant 0 : i32
    %c0_i32_0 = arith.constant 0 : i32
    return %1, %c0_i32 : i32, i32
  }
  func.func @transform_2(%arg0: i32, %arg1: i32) -> (i32, i32) {
    %c0_i32 = arith.constant 0 : i32
    %c0_i32_0 = arith.constant 0 : i32
    return %arg0, %c0_i32 : i32, i32
  }
}

</mosaic_0001>

<bundles_post_ra>
// kernel: tpu_custom_call.1
= control target key start
LH: loop header
LB: loop body
LE: loop exit
PB: predicated region body
PF: predicated region fallthrough
CT: control target
= control target key end

     0   :  { %7 = vsyncpa [#allocation4], 0  ;;  %s283_s0 = inlined_call_operand.hbm [shape: f32[1,512], index: 0, kind: input, shape index: {}]   ;;  %s284_s1 = inlined_call_operand.hbm [shape: f32[1,512], index: 1, kind: input, shape index: {}]   ;;  %s285_s2 = inlined_call_operand.hbm [shape: f32[1,1], index: 2, kind: output, shape index: {}]  }
   0x1   :  { %8 = vsyncpa [#allocation7], 0 }
   0x2   :  { %9 = vsyncpa [#allocation5], 0  ;;  %s220_s9 = smov [#allocation3]   ;;  %s221_s11 = smov [#allocation6]  }
   0x3   :  { %s20_s10 = sshll.u32 %s220_s9, 4  ;;  %s34_s12 = sshll.u32 %s221_s11, 4  ;;  %s21_s10 = int_to_ptr.vmem [resolvable:$true] %s20_s10  ;;  %s35_s12 = int_to_ptr.vmem [resolvable:$true] %s34_s12 }
   0x4   :  { %s148_s15 = scalar_lea.hbm %s283_s0, 64 }
   0x5   :  { %p149_p0 = scmp.ne.s32.totalorder %s283_s0, %s148_s15  ;;  %p152_p1 = scmp.lt.u32.totalorder %s148_s15, %s283_s0 }
   0x7   :  { %p154_p2 = pnand %p152_p1, %p149_p0 }
   0x9   :  { %157 = shalt.err (!%p154_p2)
}
   0xa   :  { %s158_s20 = scalar_lea.vmem %s21_s10, 64  ;;  %p163_p4 = scmp.lt.s32.totalorder %s21_s10, %s21_s10 }
   0xb   :  { %p159_p3 = scmp.ne.s32.totalorder %s21_s10, %s158_s20  ;;  %p164_p5 = scmp.lt.s32.totalorder %s158_s20, %s158_s20 }
   0xd   :  { %p165_p6 = por %p164_p5, %p163_p4 }
   0xf   :  { %p166_p7 = pnand %p165_p6, %p159_p3 }
  0x11   :  { %169 = shalt.err (!%p166_p7)
}
  0x12   :  { %23 = dma.hbm_to_vmem [thread:$0]  %s283_s0, 64, %s21_s10, [#allocation4]  }
  0x13   :  { %s170_s25 = scalar_lea.hbm %s284_s1, 64 }
  0x14   :  { %p171_p8 = scmp.ne.s32.totalorder %s284_s1, %s170_s25  ;;  %p174_p9 = scmp.lt.u32.totalorder %s170_s25, %s284_s1 }
  0x16   :  { %p176_p10 = pnand %p174_p9, %p171_p8 }
  0x18   :  { %179 = shalt.err (!%p176_p10)
}
  0x19   :  { %s180_s30 = scalar_lea.vmem %s35_s12, 64  ;;  %p185_p12 = scmp.lt.s32.totalorder %s35_s12, %s35_s12 }
  0x1a   :  { %p181_p11 = scmp.ne.s32.totalorder %s35_s12, %s180_s30  ;;  %p186_p13 = scmp.lt.s32.totalorder %s180_s30, %s180_s30 }
  0x1c   :  { %p187_p0 = por %p186_p13, %p185_p12 }
  0x1e   :  { %p188_p1 = pnand %p187_p0, %p181_p11 }
  0x20   :  { %191 = shalt.err (!%p188_p1)
}
  0x21   :  { %37 = dma.hbm_to_vmem [thread:$0]  %s284_s1, 64, %s35_s12, [#allocation7]  }
  0x22   :  { %214 = dma.done.wait [#allocation4], 64  }
  0x23   :  { %215 = vsyncadd [#allocation4], 4294967232 }
  0x24   :  { %216 = dma.done.wait [#allocation7], 64  }
  0x25   :  { %217 = vsyncadd [#allocation7], 4294967232  ;;  %v50_v0 = vlaneseq  ;;  %v222_v2 = vmov 0.0   ;;  %v55_v3 = vld [vmem:[#allocation3] sm:$0xf]  ;;  %vm102_vm1 = vcmask 1040384  }
  0x26   :  { %v62_v4 = vand.u32 2147483647, %v55_v3  ;;  %v56_v7 = vld [vmem:[#allocation6] sm:$0xf]  ;;  %v59_v12 = vmax.f32 %v55_v3, 0.0  ;;  %s223_s1 = smov [#allocation8]  }
  0x27   :  { %vm263_vm0 = vcmp.lt.s32.totalorder %v50_v0, 512  ;;  %v57_v9 = vmul.f32 0.99, %v56_v7  ;;  %v83_v20 = vshrl.u32 %v50_v0, 7  ;;  %s128_s4 = sshll.u32 %s223_s1, 4  ;;  %vm120_vm2 = vcmask 0   ;;  %s129_s4 = int_to_ptr.vmem [resolvable:$true] %s128_s4 }
  0x28   :  { %54 = vst.msk [vmem:[#allocation2] sm:$0xf] %vm263_vm0, %v222_v2  ;;  %v63_v5 = vsub.f32 0.0, %v62_v4  ;;  %s192_s6 = scalar_lea.vmem %s129_s4, 16  ;;  %s196_s7 = scalar_lea.vmem %s129_s4, 32 }
  0x29   :  { %v58_v11 = vadd.f32 0.0003125, %v57_v9  ;;  %v84_v21 = vsub.s32 0, %v83_v20  ;;  %v88_v22 = vsub.s32 1, %v83_v20  ;;  %v92_v23 = vsub.s32 2, %v83_v20  ;;  %p193_p2 = scmp.ne.s32.totalorder %s129_s4, %s192_s6  ;;  %p197_p3 = scmp.lt.s32.totalorder %s129_s4, %s129_s4 }
  0x2a   :  { %v64_v6 = vmul.f32 1.442695, %v63_v5  ;;  %v96_v24 = vsub.s32 3, %v83_v20  ;;  %p198_p4 = scmp.lt.s32.totalorder %s196_s7, %s192_s6 }
  0x2b   :  { %v60_v13 = vmul.f32 %v58_v11, %v55_v3 }
  0x2c   :  { %144 = vpow2.f32 %v64_v6  ;;  %p199_p5 = por %p198_p4, %p197_p3 }
  0x2d   :  { %v61_v14 = vsub.f32 %v59_v12, %v60_v13 }
  0x2e   :  { %p200_p6 = pnand %p199_p5, %p193_p2 }
  0x2f   :  { %v70_v17 = vld [vmem:[#allocation2] sm:$0xf] }
  0x36   :  { %v145_v8 = vpop.eup %144 }
  0x37   :  { %v66_v10 = vadd.f32 1.0, %v145_v8 }
  0x39   :  { %146 = vlog2.f32 %v66_v10 }
  0x43   :  { %v147_v15 = vpop.eup %146 }
  0x44   :  { %v68_v16 = vmul.f32 0.6931472, %v147_v15 }
  0x46   :  { %v69_v18 = vadd.f32 %v68_v16, %v61_v14 }
  0x48   :  { %v71_v19 = vadd.f32 %v70_v17, %v69_v18 }
  0x4a   :  { %76 = vst.msk [vmem:[#allocation2] sm:$0xf] %vm263_vm0, %v71_v19 }
  0x51   :  { %v80_v25 = vld [vmem:[#allocation2] sm:$0xf] }
  0x52   :  { %v85_v26 = vrot.slane %v80_v25, %v84_v21  ;;  %v89_v27 = vrot.slane %v80_v25, %v88_v22  ;;  %v93_v28 = vrot.slane %v80_v25, %v92_v23  ;;  %v97_v29 = vrot.slane %v80_v25, %v96_v24 }
  0x54   :  { %v103_v30 = vsel %vm102_vm1, %v85_v26, 0.0  ;;  %v104_v31 = vsel %vm102_vm1, %v89_v27, 0.0  ;;  %v106_v32 = vsel %vm102_vm1, %v93_v28, 0.0  ;;  %v108_v34 = vsel %vm102_vm1, %v97_v29, 0.0 }
  0x55   :  { %v105_v33 = vadd.f32 %v104_v31, %v103_v30 }
  0x57   :  { %v107_v35 = vadd.f32 %v106_v32, %v105_v33 }
  0x59   :  { %v109_v36 = vadd.f32 %v108_v34, %v107_v35 }
  0x5b   :  { %110 = vadd.xlane.f32.xlu0 %v109_v36 }
  0xe8   :  { %v111_v37 = vpop.xlane.xlu0 %110 }
  0xe9   :  { %v112_v38 = vrot.slane %v111_v37, 4 }
  0xeb   :  { %v113_v39 = vadd.f32 %v112_v38, %v111_v37 }
  0xed   :  { %v114_v40 = vrot.slane %v113_v39, 2 }
  0xef   :  { %v115_v41 = vadd.f32 %v114_v40, %v113_v39 }
  0xf1   :  { %v116_v42 = vrot.slane %v115_v41, 1 }
  0xf3   :  { %v117_v43 = vadd.f32 %v116_v42, %v115_v41 }
  0xf5   :  { %138 = vpush %v117_v43 }
 0x126   :  { %s139_s5 = spop %138 }
 0x127   :  { %v119_v44 = vstv %s139_s5 }
 0x128   :  { %121 = vst.msk [vmem:[#allocation8] sm:$0x1] %vm120_vm2, %v119_v44 }
 0x129   :  { %203 = shalt.err (!%p200_p6)
}
 0x12a   :  { %s204_s10 = scalar_lea.hbm %s285_s2, 16 }
 0x12b   :  { %p205_p7 = scmp.ne.s32.totalorder %s285_s2, %s204_s10  ;;  %p208_p8 = scmp.lt.u32.totalorder %s204_s10, %s285_s2 }
 0x12d   :  { %p210_p9 = pnand %p208_p8, %p205_p7 }
 0x12f   :  { %213 = shalt.err (!%p210_p9)
}
 0x130   :  { %131 = dma.vmem_to_hbm [thread:$0]  %s129_s4, 16, %s285_s2, [#allocation5]  }
 0x131   :  { %218 = dma.done.wait [#allocation5], 16  }
 0x132   :  { %219 = vsyncadd [#allocation5], 4294967280 }
 0x133   :  { %135 = vsyncpa [#allocation4], 1 }
 0x134   :  { %136 = vsyncpa [#allocation7], 1 }
 0x135   :  { %137 = vsyncpa [#allocation5], 1 }

</bundles_post_ra>
